<compile_context>
chip_gen: v7x
topology: tpu7x:2x2x1
jax: 0.10.0
libtpu: 0.0.40
codegen_flags: <defaults>
</compile_context>

<pallas_src>
import functools

import jax
import jax.numpy as jnp
from jax.experimental import pallas as pl
from jax.experimental.pallas import tpu as pltpu


def _rotate_lanes(x, shift, size):
    """jnp.roll-equivalent rotation along the last (lane) axis; `shift` is a static int."""
    shift = shift % size
    if shift == 0:
        return x
    if size % 128 == 0:
        return pltpu.roll(x, shift, axis=1)          # XLU lane rotate (off the VALU/vst path)
    # Fallback for lane sizes that are not a multiple of 128.
    return jnp.concatenate([x[:, size - shift:], x[:, :size - shift]], axis=1)


def _cpe_kernel(w_ref, x_ref, o_ref, *, k: int, H: int, W: int):
    """One (batch, channel-block) tile; channels on sublanes, H*W on lanes.

    w_ref: VMEM (c_blk, k*k+1) f32 -- per-channel taps (residual folded into the center
           tap) followed by the bias.
    x_ref: VMEM (1, c_blk, H*W) input tile.
    o_ref: VMEM (1, c_blk, H*W) output tile.
    """
    p = k // 2
    n_taps = k * k
    HW = H * W

    x = x_ref[0].astype(jnp.float32)                  # (c_blk, HW); cast hoisted
    w = w_ref[...].astype(jnp.float32)                # (c_blk, n_taps + 1)

    lane = jax.lax.broadcasted_iota(jnp.int32, x.shape, 1)
    col = lane % W                                    # column (w) index of each lane

    # Column-shifted copies of x, built once and reused by all k rows:
    # xs[c][., h*W + w] == x[h, w + (c - p)]  (zero outside the row).
    xs = []
    for j in range(-p, p + 1):
        if j == 0:
            xs.append(x)
        else:
            shifted = _rotate_lanes(x, -j, HW)
            valid = (col >= -j) if j < 0 else (col < W - j)
            xs.append(jnp.where(valid, shifted, 0.0))

    # Row-factored stencil: row_r = sum_c w[:, r*k+c] * xs[c];
    # y = bias + sum_r shift_h(row_r, r - p)  (per-channel weights broadcast along lanes).
    acc = w[:, n_taps:n_taps + 1]                     # bias, (c_blk, 1) -> broadcasts over lanes
    for r in range(k):
        i = r - p
        row = xs[0] * w[:, r * k:r * k + 1]
        for c in range(1, k):
            row = row + xs[c] * w[:, r * k + c:r * k + c + 1]
        if i == 0:
            acc = acc + row
        else:
            rolled = _rotate_lanes(row, -i * W, HW)
            valid = (lane >= -i * W) if i < 0 else (lane < HW - i * W)
            acc = acc + jnp.where(valid, rolled, 0.0)

    o_ref[0] = acc.astype(o_ref.dtype)


def _pick_channel_block(B, C, H, W, itemsize, *, vmem_budget_bytes=10 << 20):
    """Largest channel block (divisor of C, sublane-aligned or == C) whose PADDED per-step
    VMEM footprint fits the budget, preferring blocks that leave >= 2 grid steps (v7x)."""
    lane_hw = ((H * W + 127) // 128) * 128            # lane padding to 128

    def footprint(cb):
        cb_pad = ((cb + 7) // 8) * 8                  # sublane padding to 8
        blk = cb_pad * lane_hw
        io = 2 * 2 * blk * itemsize                   # x + y blocks, double-buffered
        temps = 8 * blk * 4                           # f32 intermediates (shifts/rows/acc/masks)
        wtab = 2 * cb_pad * 128 * 4                   # weight-table block, double-buffered
        return io + temps + wtab

    cands = [d for d in range(1, C + 1)
             if C % d == 0 and (d % 8 == 0 or d == C)]
    fits = [d for d in cands if footprint(d) <= vmem_budget_bytes] or [min(cands)]
    multi = [d for d in fits if B * (C // d) >= 2]    # keep >= 2 steps for megacore sharding
    return max(multi) if multi else max(fits)


def conditional_positional_encoding(x_nchw, weight, bias, *, k: int = 3):
    """x_nchw: (B, C, H, W); weight: (C, 1, k, k) depthwise (PyTorch layout); bias: (C,)."""
    assert k % 2 == 1, "k must be odd"
    # TODO(synk): dilation d > 1 is not supported (the reference module's residual add only
    # shape-checks for d == 1 anyway).
    B, C, H, W = x_nchw.shape
    n_taps = k * k
    HW = H * W

    # Per-channel tap table: k*k taps (center tap += 1.0 folds the residual) then the bias.
    w_taps = weight[:, 0, :, :].reshape(C, n_taps).astype(jnp.float32)
    w_taps = w_taps.at[:, n_taps // 2].add(1.0)
    w_tbl = jnp.concatenate(
        [w_taps, bias.reshape(C, 1).astype(jnp.float32)], axis=1)       # (C, k*k + 1)

    # Row-major reshape is free (no data movement): channels -> sublanes, H*W -> lanes.
    x_flat = x_nchw.reshape(B, C, HW)

    c_blk = _pick_channel_block(B, C, H, W, x_nchw.dtype.itemsize)
    kernel = functools.partial(_cpe_kernel, k=k, H=H, W=W)

    # Roofline hint: memory-bound (read x + write y + tiny weight table).
    bytes_accessed = 2 * B * C * HW * x_nchw.dtype.itemsize + C * (n_taps + 1) * 4
    flops = 2 * n_taps * B * C * HW

    out = pl.pallas_call(
        kernel,
        out_shape=jax.ShapeDtypeStruct((B, C, HW), x_nchw.dtype),
        grid_spec=pltpu.PrefetchScalarGridSpec(
            num_scalar_prefetch=0,
            grid=(B, C // c_blk),
            in_specs=[
                pl.BlockSpec((c_blk, n_taps + 1), lambda b, cb: (cb, 0)),   # weight table
                pl.BlockSpec((1, c_blk, HW), lambda b, cb: (b, cb, 0)),     # x block
            ],
            out_specs=pl.BlockSpec((1, c_blk, HW), lambda b, cb: (b, cb, 0)),
        ),
        compiler_params=pltpu.CompilerParams(
            dimension_semantics=("parallel", "parallel")),
        cost_estimate=pl.CostEstimate(
            flops=flops, transcendentals=0, bytes_accessed=bytes_accessed),
    )(w_tbl, x_flat)
    return out.reshape(B, C, H, W)


def _reference(x_nchw, weight, bias, *, k: int = 3):
    """Plain-JAX reference (grouped conv) for verification."""
    C = x_nchw.shape[1]
    p = k // 2
    y = jax.lax.conv_general_dilated(
        x_nchw.astype(jnp.float32),
        weight.astype(jnp.float32),
        window_strides=(1, 1),
        padding=((p, p), (p, p)),
        dimension_numbers=("NCHW", "OIHW", "NCHW"),
        feature_group_count=C,
    )
    y = y + bias.astype(jnp.float32).reshape(1, C, 1, 1)
    return (x_nchw.astype(jnp.float32) + y).astype(x_nchw.dtype)


if __name__ == "__main__":
    B, C, H, W = 2, 4, 16, 16
    k = 3

    key = jax.random.PRNGKey(0)
    kx, kw, kb = jax.random.split(key, 3)

    x = jax.random.normal(kx, (B, C, H, W), dtype=jnp.float32)
    # Same parameter shapes as nn.Conv2d(dim, dim, k, padding=k//2, groups=dim).
    weight = jax.random.normal(kw, (C, 1, k, k), dtype=jnp.float32) * 0.1
    bias = jax.random.normal(kb, (C,), dtype=jnp.float32) * 0.1

    out = conditional_positional_encoding(x, weight, bias, k=k)
    out = jax.block_until_ready(out)

    ref = _reference(x, weight, bias, k=k)
    assert out.shape == (B, C, H, W)
    assert jnp.max(jnp.abs(out - ref)) < 1e-4, "mismatch vs reference"

    print("KERNEL_OK")
</pallas_src>

<mosaic_0001>
module attributes {stable_mosaic.version = 11 : i64} {
  func.func @_cpe_kernel(%arg0: i32, %arg1: i32, %arg2: memref<4x10xf32, #tpu.memory_space<vmem>>, %arg3: memref<1x4x256xf32, #tpu.memory_space<vmem>>, %arg4: memref<1x4x256xf32, #tpu.memory_space<vmem>>) attributes {dimension_semantics = [#tpu.dimension_semantics<parallel>, #tpu.dimension_semantics<parallel>], iteration_bounds = array<i64: 2, 1>, scalar_prefetch = 0 : i64, scratch_operands = 0 : i64, tpu.core_type = #tpu.core_type<tc>, window_params = [{transform_indices = @transform_0, window_bounds = array<i64: 4, 10>}, {transform_indices = @transform_1, window_bounds = array<i64: 1, 4, 256>}, {transform_indices = @transform_2, window_bounds = array<i64: 1, 4, 256>}]} {
    %c0 = arith.constant 0 : index
    %c0_0 = arith.constant 0 : index
    %c0_1 = arith.constant 0 : index
    %0 = vector.load %arg3[%c0, %c0_0, %c0_1] : memref<1x4x256xf32, #tpu.memory_space<vmem>>, vector<1x4x256xf32>
    %1 = vector.shape_cast %0 : vector<1x4x256xf32> to vector<4x256xf32>
    %c0_2 = arith.constant 0 : index
    %c0_3 = arith.constant 0 : index
    %2 = vector.load %arg2[%c0_2, %c0_3] : memref<4x10xf32, #tpu.memory_space<vmem>>, vector<4x10xf32>
    %3 = tpu.iota {dimensions = array<i32: 1>} : vector<4x256xi32>
    %c16_i32 = arith.constant 16 : i32
    %c0_i32 = arith.constant 0 : i32
    %4 = arith.cmpi eq, %c16_i32, %c0_i32 : i32
    %c1_i32 = arith.constant 1 : i32
    %5 = arith.select %4, %c1_i32, %c16_i32 : i32
    %6 = vector.broadcast %5 : i32 to vector<4x256xi32>
    %7 = arith.remsi %3, %6 : vector<4x256xi32>
    %c0_i32_4 = arith.constant 0 : i32
    %8 = vector.broadcast %c0_i32_4 : i32 to vector<4x256xi32>
    %9 = arith.cmpi ne, %7, %8 : vector<4x256xi32>
    %c0_i32_5 = arith.constant 0 : i32
    %10 = vector.broadcast %c0_i32_5 : i32 to vector<4x256xi32>
    %11 = arith.cmpi slt, %7, %10 : vector<4x256xi32>
    %c0_i32_6 = arith.constant 0 : i32
    %12 = arith.cmpi slt, %5, %c0_i32_6 : i32
    %13 = vector.broadcast %12 : i1 to vector<4x256xi1>
    %14 = vector.broadcast %13 : vector<4x256xi1> to vector<4x256xi1>
    %15 = arith.xori %11, %14 : vector<4x256xi1>
    %16 = arith.andi %15, %9 : vector<4x256xi1>
    %17 = vector.broadcast %5 : i32 to vector<4x256xi32>
    %18 = arith.addi %7, %17 : vector<4x256xi32>
    %19 = arith.select %16, %18, %7 : vector<4x256xi1>, vector<4x256xi32>
    %c1_i32_7 = arith.constant 1 : i32
    %20 = tpu.dynamic_rotate %1 by %c1_i32_7 dim 1 : vector<4x256xf32>, i32 -> vector<4x256xf32>
    %c1_i32_8 = arith.constant 1 : i32
    %21 = vector.broadcast %c1_i32_8 : i32 to vector<4x256xi32>
    %22 = arith.cmpi sge, %19, %21 : vector<4x256xi32>
    %cst = arith.constant 0.000000e+00 : f32
    %23 = vector.broadcast %cst : f32 to vector<4x256xf32>
    %24 = arith.select %22, %20, %23 : vector<4x256xi1>, vector<4x256xf32>
    %c255_i32 = arith.constant 255 : i32
    %25 = tpu.dynamic_rotate %1 by %c255_i32 dim 1 : vector<4x256xf32>, i32 -> vector<4x256xf32>
    %c15_i32 = arith.constant 15 : i32
    %26 = vector.broadcast %c15_i32 : i32 to vector<4x256xi32>
    %27 = arith.cmpi slt, %19, %26 : vector<4x256xi32>
    %cst_9 = arith.constant 0.000000e+00 : f32
    %28 = vector.broadcast %cst_9 : f32 to vector<4x256xf32>
    %29 = arith.select %27, %25, %28 : vector<4x256xi1>, vector<4x256xf32>
    %30 = vector.extract_strided_slice %2 {offsets = [0, 9], sizes = [4, 1], strides = [1, 1]} : vector<4x10xf32> to vector<4x1xf32>
    %31 = vector.extract_strided_slice %2 {offsets = [0, 0], sizes = [4, 1], strides = [1, 1]} : vector<4x10xf32> to vector<4x1xf32>
    %32 = vector.broadcast %31 : vector<4x1xf32> to vector<4x256xf32>
    %33 = arith.mulf %24, %32 : vector<4x256xf32>
    %34 = vector.extract_strided_slice %2 {offsets = [0, 1], sizes = [4, 1], strides = [1, 1]} : vector<4x10xf32> to vector<4x1xf32>
    %35 = vector.broadcast %34 : vector<4x1xf32> to vector<4x256xf32>
    %36 = arith.mulf %1, %35 : vector<4x256xf32>
    %37 = arith.addf %33, %36 : vector<4x256xf32>
    %38 = vector.extract_strided_slice %2 {offsets = [0, 2], sizes = [4, 1], strides = [1, 1]} : vector<4x10xf32> to vector<4x1xf32>
    %39 = vector.broadcast %38 : vector<4x1xf32> to vector<4x256xf32>
    %40 = arith.mulf %29, %39 : vector<4x256xf32>
    %41 = arith.addf %37, %40 : vector<4x256xf32>
    %c16_i32_10 = arith.constant 16 : i32
    %42 = tpu.dynamic_rotate %41 by %c16_i32_10 dim 1 : vector<4x256xf32>, i32 -> vector<4x256xf32>
    %c16_i32_11 = arith.constant 16 : i32
    %43 = vector.broadcast %c16_i32_11 : i32 to vector<4x256xi32>
    %44 = arith.cmpi sge, %3, %43 : vector<4x256xi32>
    %cst_12 = arith.constant 0.000000e+00 : f32
    %45 = vector.broadcast %cst_12 : f32 to vector<4x256xf32>
    %46 = arith.select %44, %42, %45 : vector<4x256xi1>, vector<4x256xf32>
    %47 = vector.broadcast %30 : vector<4x1xf32> to vector<4x256xf32>
    %48 = arith.addf %47, %46 : vector<4x256xf32>
    %49 = vector.extract_strided_slice %2 {offsets = [0, 3], sizes = [4, 1], strides = [1, 1]} : vector<4x10xf32> to vector<4x1xf32>
    %50 = vector.broadcast %49 : vector<4x1xf32> to vector<4x256xf32>
    %51 = arith.mulf %24, %50 : vector<4x256xf32>
    %52 = vector.extract_strided_slice %2 {offsets = [0, 4], sizes = [4, 1], strides = [1, 1]} : vector<4x10xf32> to vector<4x1xf32>
    %53 = vector.broadcast %52 : vector<4x1xf32> to vector<4x256xf32>
    %54 = arith.mulf %1, %53 : vector<4x256xf32>
    %55 = arith.addf %51, %54 : vector<4x256xf32>
    %56 = vector.extract_strided_slice %2 {offsets = [0, 5], sizes = [4, 1], strides = [1, 1]} : vector<4x10xf32> to vector<4x1xf32>
    %57 = vector.broadcast %56 : vector<4x1xf32> to vector<4x256xf32>
    %58 = arith.mulf %29, %57 : vector<4x256xf32>
    %59 = arith.addf %55, %58 : vector<4x256xf32>
    %60 = arith.addf %48, %59 : vector<4x256xf32>
    %61 = vector.extract_strided_slice %2 {offsets = [0, 6], sizes = [4, 1], strides = [1, 1]} : vector<4x10xf32> to vector<4x1xf32>
    %62 = vector.broadcast %61 : vector<4x1xf32> to vector<4x256xf32>
    %63 = arith.mulf %24, %62 : vector<4x256xf32>
    %64 = vector.extract_strided_slice %2 {offsets = [0, 7], sizes = [4, 1], strides = [1, 1]} : vector<4x10xf32> to vector<4x1xf32>
    %65 = vector.broadcast %64 : vector<4x1xf32> to vector<4x256xf32>
    %66 = arith.mulf %1, %65 : vector<4x256xf32>
    %67 = arith.addf %63, %66 : vector<4x256xf32>
    %68 = vector.extract_strided_slice %2 {offsets = [0, 8], sizes = [4, 1], strides = [1, 1]} : vector<4x10xf32> to vector<4x1xf32>
    %69 = vector.broadcast %68 : vector<4x1xf32> to vector<4x256xf32>
    %70 = arith.mulf %29, %69 : vector<4x256xf32>
    %71 = arith.addf %67, %70 : vector<4x256xf32>
    %c240_i32 = arith.constant 240 : i32
    %72 = tpu.dynamic_rotate %71 by %c240_i32 dim 1 : vector<4x256xf32>, i32 -> vector<4x256xf32>
    %c240_i32_13 = arith.constant 240 : i32
    %73 = vector.broadcast %c240_i32_13 : i32 to vector<4x256xi32>
    %74 = arith.cmpi slt, %3, %73 : vector<4x256xi32>
    %cst_14 = arith.constant 0.000000e+00 : f32
    %75 = vector.broadcast %cst_14 : f32 to vector<4x256xf32>
    %76 = arith.select %74, %72, %75 : vector<4x256xi1>, vector<4x256xf32>
    %77 = arith.addf %60, %76 : vector<4x256xf32>
    %c0_15 = arith.constant 0 : index
    %c0_16 = arith.constant 0 : index
    %c0_17 = arith.constant 0 : index
    %78 = vector.load %arg4[%c0_15, %c0_16, %c0_17] : memref<1x4x256xf32, #tpu.memory_space<vmem>>, vector<1x4x256xf32>
    %79 = vector.shape_cast %78 : vector<1x4x256xf32> to vector<4x256xf32>
    %80 = vector.shape_cast %77 : vector<4x256xf32> to vector<1x4x256xf32>
    tpu.vector_store %arg4[%c0_15, %c0_16, %c0_17], %80 {strides = array<i32>} : memref<1x4x256xf32, #tpu.memory_space<vmem>>, vector<1x4x256xf32>,
    return
  }
  func.func @transform_0(%arg0: i32, %arg1: i32) -> (i32, i32) {
    %c0_i32 = arith.constant 0 : i32
    %c0_i32_0 = arith.constant 0 : i32
    return %arg1, %c0_i32 : i32, i32
  }
  func.func @transform_1(%arg0: i32, %arg1: i32) -> (i32, i32, i32) {
    %c0_i32 = arith.constant 0 : i32
    %c0_i32_0 = arith.constant 0 : i32
    return %arg0, %arg1, %c0_i32 : i32, i32, i32
  }
  func.func @transform_2(%arg0: i32, %arg1: i32) -> (i32, i32, i32) {
    %c0_i32 = arith.constant 0 : i32
    %c0_i32_0 = arith.constant 0 : i32
    return %arg0, %arg1, %c0_i32 : i32, i32, i32
  }
}

</mosaic_0001>

<bundles_post_ra>
// kernel: tpu_custom_call.1
= control target key start
LH: loop header
LB: loop body
LE: loop exit
PB: predicated region body
PF: predicated region fallthrough
CT: control target
= control target key end

     0   :  { %7 = vsyncpa [#allocation3], 0  ;;  %s1038_s0 = inlined_call_operand.hbm [shape: f32[4,10], index: 0, kind: input, shape index: {}]   ;;  %s1039_s1 = inlined_call_operand.hbm [shape: f32[2,4,256], index: 1, kind: input, shape index: {}]   ;;  %s1040_s2 = inlined_call_operand.hbm [shape: f32[2,4,256], index: 2, kind: output, shape index: {}]  }
   0x1   :  { %8 = vsyncpa [#allocation6], 0 }
   0x2   :  { %10 = vsyncpa [#allocation6 + $0x1], 0 }
   0x3   :  { %11 = vsyncpa [#allocation4], 0 }
   0x4   :  { %13 = vsyncpa [#allocation4 + $0x1], 0  ;;  %s796_s9 = smov 0   ;;  %s798_s10 = smov 0  }
   0x5   :  { %s800_s11 = smov 0   ;;  %s802_s12 = smov 0  }
   0x6   :  { %s804_s13 = smov 0   ;;  %s806_s14 = smov 0  }
   0x7 LB: > { %s498_s15 = sadd.s32 4294967295, %s761_s14   ;;  %s499_s16 = sadd.s32 4294967294, %s761_s14   ;;  %s761_s14 = sphi %s806_s14, %s19_s14   ;;  %s757_s13 = sphi %s804_s13, %s1065_s13   ;;  %s753_s12 = sphi %s802_s12, %s1064_s12   ;;  %s749_s11 = sphi %s800_s11, %s1063_s11   ;;  %s745_s10 = sphi %s798_s10, %s1062_s10   ;;  %s741_s9 = sphi %s796_s9, %s1061_s9  }
   0x8   : > { %p79_p0 = scmp.ne.s32.totalorder %s745_s10, %s741_s9  ;;  %p830_p1 = scmp.eq.s32.totalorder %s498_s15, 0 }
   0x9   : > { %p834_p2 = scmp.eq.s32.totalorder %s498_s15, 1  ;;  %p111_p3 = scmp.eq.s32.totalorder %s499_s16, 1 }
   0xa   : > { %s1045_s17 = scalar_select %p830_p1, 1, 0 }
   0xb   : > { %s1046_s18 = scalar_select %p834_p2, 1, 0 }
   0xc   : > { %p840_p4 = por %p830_p1, %p79_p0  ;;  %p500_p5 = scmp.ge.s32.totalorder %s761_s14, 1 }
   0xd   : > { %p845_p6 = por %p111_p3, %p79_p0  ;;  %p118_p7 = scmp.lt.s32.totalorder %s761_s14, 3 }
   0xe   : > { %s1047_s19 = scalar_select %p840_p4, 1, 0 }
   0xf   : > { %s1048_s20 = scalar_select %p845_p6, 1, 0 }
  0x10   : > { %p850_p8 = pnand %p500_p5, %p118_p7  ;;  %s763_s22 = smov [#allocation2]  }
  0x11   : > { %s133_s23 = sshll.u32 %s763_s22, 4  ;;  %s31_s25 = sadd.s32 1, %s757_s13  ;;  %s134_s23 = int_to_ptr.vmem [resolvable:$true] %s133_s23 }
  0x12   : > { %s1049_s21 = scalar_select %p850_p8, 1, 0 }
  0x13   : > { %p525_p10 = pneg %p850_p8  ;;  %s66_s26 = sadd.s32 1, %s749_s11 }
  0x14   : > { %p865_p12 = scmp.ge.s32.totalorder %s31_s25, 2  ;;  %s617_s30 = scalar_lea.hbm %s1038_s0, 64 }
  0x15   : > { %p859_p11 = pnand %p525_p10, %p830_p1  ;;  %p618_p13 = scmp.ne.s32.totalorder %s1038_s0, %s617_s30 }
  0x16   : > { %s1051_s27 = scalar_select %p865_p12, 1, 0 }
  0x17   : > { %p619_p0 = pneg %p859_p11  ;;  %p624_p7 = scmp.lt.u32.totalorder %s617_s30, %s1038_s0 }
  0x19   : > { %p620_p3 = pnand %p619_p0, %p618_p13 }
  0x1b   : > { %p621_p5 = pneg %p620_p3 }
  0x1d   : > { %p626_p10 = pnand %p624_p7, %p621_p5 }
  0x1f   : > { %629 = shalt.err (!%p626_p10)
}
  0x20   : > { %s630_s7 = scalar_lea.vmem %s134_s23, 64  ;;  %p638_p1 = scmp.lt.s32.totalorder %s134_s23, %s134_s23 }
  0x21   : > { %p631_p9 = scmp.ne.s32.totalorder %s134_s23, %s630_s7  ;;  %p639_p8 = scmp.lt.s32.totalorder %s630_s7, %s630_s7 }
  0x23   : > { %p633_p6 = pnand %p631_p9, %p619_p0  ;;  %p640_p2 = por %p639_p8, %p638_p1 }
  0x25   : > { %p634_p4 = pneg %p633_p6 }
  0x27   : > { %p641_p12 = pnand %p640_p2, %p634_p4 }
  0x29   : > { %644 = shalt.err (!%p641_p12)
}
  0x2a   : > { %528 = dma.hbm_to_vmem [thread:$0]  (!%p859_p11), %s1038_s0, 64, %s134_s23, [#allocation3]  }
  0x2b   : > { %p1052_p1 = scmp.ne.s32.totalorder %s1051_s27, 0  ;;  %p73_p2 = scmp.ne.s32.totalorder %s749_s11, %s745_s10 }
  0x2c   : > { %p74_p4 = scmp.eq.s32.totalorder %s761_s14, 0  ;;  %p538_p6 = scmp.lt.s32.totalorder %s761_s14, 2 }
  0x2d   : > { %s1067_s25 = smov (%p1052_p1, %s31_s25), 0  ;;  %p1053_p12 = scmp.ne.s32.totalorder %s1046_s18, 0 }
  0x2e   : > { %s61_s16 = ssub.s32 %s757_s13, %s1067_s25  ;;  %p75_p9 = por %p74_p4, %p73_p2 }
  0x2f   : > { %p64_p8 = scmp.eq.s32.totalorder %s61_s16, 0  ;;  %p897_p13 = por %p1053_p12, %p73_p2 }
  0x30   : > { %s144_s24 = sand.u32 1, %s749_s11   ;;  %s515_s27 = sshll.u32 %s757_s13, 7 }
  0x31   : > { %s905_s28 = scalar_select %p64_p8, %s749_s11, %s66_s26  }
  0x32   : > { %s503_s23 = sshll.u32 %s144_s24, 3  ;;  %s911_s3 = scalar_lea.hbm %s1039_s1, %s515_s27 }
  0x33   : > { %s148_s18 = scalar_lea.vmem [#allocation5], %s503_s23  ;;  %p915_p11 = pnand %p538_p6, %p75_p9 }
  0x34   : > { %s158_s4 = sshll.u32 %s148_s18, 4  ;;  %s145_s26 = scalar_lea.sflag [#allocation6], %s144_s24  ;;  %s913_s4 = int_to_ptr.vmem [resolvable:$true] %s158_s4 }
  0x35   : > { %s645_s6 = scalar_lea.hbm %s911_s3, 128  ;;  %p647_p3 = pneg %p915_p11 }
  0x36   : > { %p646_p0 = scmp.ne.s32.totalorder %s911_s3, %s645_s6  ;;  %s650_s15 = scalar_lea.hbm %s1039_s1, 256 }
  0x37   : > { %p651_p10 = scmp.lt.u32.totalorder %s911_s3, %s1039_s1  ;;  %p652_p1 = scmp.lt.u32.totalorder %s650_s15, %s645_s6 }
  0x38   : > { %p648_p5 = pnand %p647_p3, %p646_p0  ;;  %p654_p4 = scmp.lt.u32.totalorder %s645_s6, %s911_s3 }
  0x39   : > { %p653_p2 = por %p652_p1, %p651_p10 }
  0x3a   : > { %p649_p7 = pneg %p648_p5 }
  0x3b   : > { %p655_p6 = por %p654_p4, %p653_p2 }
  0x3d   : > { %p656_p8 = pnand %p655_p6, %p649_p7 }
  0x3f   : > { %659 = shalt.err (!%p656_p8)
}
  0x40   : > { %s660_s24 = scalar_lea.vmem %s913_s4, 128  ;;  %s764_s27 = smov [#allocation5]  }
  0x41   : > { %p661_p9 = scmp.ne.s32.totalorder %s913_s4, %s660_s24  ;;  %s665_s29 = sshll.u32 %s764_s27, 4  ;;  %s666_s29 = int_to_ptr.vmem [resolvable:$false] %s665_s29 }
  0x42   : > { %s667_s30 = scalar_lea.vmem %s666_s29, 256  ;;  %p668_p5 = scmp.lt.s32.totalorder %s913_s4, %s666_s29 }
  0x43   : > { %p663_p12 = pnand %p661_p9, %p647_p3  ;;  %p669_p10 = scmp.lt.s32.totalorder %s667_s30, %s660_s24 }
  0x45   : > { %p664_p0 = pneg %p663_p12  ;;  %p670_p1 = por %p669_p10, %p668_p5 }
  0x47   : > { %p671_p2 = pnand %p670_p1, %p664_p0 }
  0x49   : > { %674 = shalt.err (!%p671_p2)
}
  0x4a   : > { %532 = dma.hbm_to_vmem [thread:$0]  (!%p915_p11), %s911_s3, 128, %s913_s4, %s145_s26  }
  0x4b   : > { %p1056_p7 = scmp.ne.s32.totalorder %s1049_s21, 0 }
  0x4c   : > { %p1057_p3 = scmp.ne.s32.totalorder (!%p1056_p7), %s1045_s17, 0 }
  0x4d   : > { %167 = sbr.rel (%p1056_p7) target bundleno = 390 (0x186), region = 28 }
  0x54   : > { %728 = dma.done.wait (%p1057_p3), [#allocation3], 64  }
  0x55   : > { %730 = vsyncadd (%p1057_p3), [#allocation3], 4294967232  ;;  %s951_s18 = sand.u32 1, %s745_s10   ;;  %p1058_p11 = scmp.ne.s32.totalorder %s1047_s19, 0 }
  0x56   : > { %s508_s5 = sshll.u32 %s951_s18, 3  ;;  %s174_s6 = scalar_lea.sflag [#allocation6], %s951_s18 }
  0x57   : > { %s177_s3 = scalar_lea.vmem [#allocation5], %s508_s5 }
  0x58   : > { %732 = dma.done.wait (%p1058_p11), %s174_s6, 128  }
  0x59   : > { %734 = vsyncadd (%p1058_p11), %s174_s6, 4294967168  ;;  %v765_v0 = vmov 7   ;;  %v766_v1 = vmov 1   ;;  %v199_v2 = vld [vmem:[#allocation2] sm:$0xf]  ;;  %v767_v3 = vmov 2   ;;  %v200_v15 = vlaneseq }
  0x5a   : > { %607 = vset.pattern.permute.xlu1 %v765_v0  ;;  %605 = vset.pattern.permute.xlu0 %v766_v1  ;;  %v768_v4 = vmov 0   ;;  %v961_v5 = vld [vmem:[%s177_s3] sm:$0xff]  ;;  %v769_v6 = vmov 6   ;;  %s770_s17 = smov 1   ;;  %v771_v8 = vmov 8   ;;  %v772_v9 = vmov 3  }
  0x5b   : > { %341 = vperm.xlu1 %607, %v199_v2   ;;  %260 = vperm.xlu0 %605, %v199_v2   ;;  %v228_v7 = vcombine.high %v961_v5, %v961_v5  ;;  %v773_v10 = vmov 4   ;;  %s774_s19 = smov 127   ;;  %v775_v11 = vmov 9   ;;  %v776_v12 = vmov 5   ;;  %s778_s21 = smov 112  }
  0x5c   : > { %v777_v16 = vmov 839922192   ;;  %v967_v20 = vand.u32 127, %v200_v15  ;;  %v266_v22 = vshrl.u32 %v200_v15, 7  ;;  %s779_s4 = smov 16   ;;  %s516_s26 = sshll.u32 %s753_s12, 7 }
  0x5d   : > { %v263_v17 = vunpack.c.l.s4 %v777_v16  ;;  %s197_s7 = scalar_lea.vmem [#allocation7], %s508_s5  ;;  %s989_s23 = scalar_lea.hbm %s1040_s2, %s516_s26 }
  0x5e   : > { %v970_v25 = vadd.s32 128, %v967_v20  ;;  %v207_v26 = vand.u32 15, %v967_v20  ;;  %vm234_vm0 = vcmp.lt.s32.totalorder %v967_v20, 1  ;;  %vm245_vm3 = vcmp.lt.s32.totalorder %v967_v20, 127  ;;  %s400_s8 = sshll.u32 %s197_s7, 4  ;;  %s384_s24 = scalar_lea.sflag [#allocation4], %s951_s18  ;;  %s991_s8 = int_to_ptr.vmem [resolvable:$true] %s400_s8 }
  0x5f   : > { %608 = vset.pattern.permute.xlu1 %v767_v3  ;;  %606 = vset.pattern.permute.xlu0 %v768_v4  ;;  %v264_v21 = vunpack.c.0.s8 %v263_v17  ;;  %vm288_vm6 = vcmp.lt.s32.totalorder %v967_v20, 16  ;;  %vm291_vm7 = vcmp.ge.s32.totalorder %v967_v20, 16  ;;  %vm369_vm8 = vcmp.lt.s32.totalorder %v967_v20, 112  ;;  %s675_s27 = scalar_lea.vmem %s991_s8, 128  ;;  %s780_s12 = smov [#allocation7]  }
  0x60   : > { %277 = vperm.xlu1 %608, %v199_v2   ;;  %254 = vperm.xlu0 %606, %v199_v2   ;;  %v214_v29 = vand.u32 15, %v970_v25  ;;  %vm237_vm1 = vcmp.ge.s32.totalorder %v207_v26, 1  ;;  %vm248_vm4 = vcmp.lt.s32.totalorder %v207_v26, 15  ;;  %vm373_vm9 = vcmp.lt.s32.totalorder %v970_v25, 240  ;;  %p676_p4 = scmp.ne.s32.totalorder %s991_s8, %s675_s27  ;;  %s679_s29 = sshll.u32 %s780_s12, 4  ;;  %s680_s29 = int_to_ptr.vmem [resolvable:$false] %s679_s29 }
  0x61   : > { %v267_v27 = vsub.s32 %v264_v21, %v266_v22  ;;  %s681_s30 = scalar_lea.vmem %s680_s29, 256  ;;  %p682_p9 = scmp.lt.s32.totalorder %s991_s8, %s680_s29 }
  0x62   : > { %vm238_vm2 = vcmp.ge.s32.totalorder %v214_v29, 1  ;;  %vm249_vm5 = vcmp.lt.s32.totalorder %v214_v29, 15  ;;  %p677_p6 = pnand %p676_p4, %p897_p13  ;;  %p683_p12 = scmp.lt.s32.totalorder %s681_s30, %s675_s27 }
  0x64   : > { %609 = vset.pattern.permute.xlu1 %v769_v6  ;;  %230 = vrot.lane.b32.xlu0 %v961_v5, %s770_s17  ;;  %p678_p8 = pneg %p677_p6  ;;  %p684_p0 = por %p683_p12, %p682_p9 }
  0x65   : > { %335 = vperm.xlu1 %609, %v199_v2   ;;  %610 = vset.pattern.permute.xlu0 %v771_v8 }
  0x66   : > { %p685_p5 = pnand %p684_p0, %p678_p8 }
  0x68   : > { %358 = vperm.xlu0 %610, %v199_v2  }
  0x69   : > { %232 = vrot.lane.b32.xlu1 %v228_v7, %s770_s17 }
  0x6a   : > { %612 = vset.pattern.permute.xlu1 %v772_v9 }
  0x6c   : > { %611 = vset.pattern.permute.xlu0 %v773_v10 }
  0x6d   : > { %241 = vrot.lane.b32.xlu1 %v961_v5, %s774_s19  ;;  %308 = vperm.xlu0 %611, %v199_v2  }
  0x71   : > { %243 = vrot.lane.b32.xlu1 %v228_v7, %s774_s19  ;;  %614 = vset.pattern.permute.xlu0 %v775_v11 }
  0x72   : > { %296 = vperm.xlu0 %614, %v199_v2  }
  0x75   : > { %302 = vperm.xlu1 %612, %v199_v2  }
  0x76   : > { %615 = vset.pattern.permute.xlu0 %v771_v8 }
  0x79   : > { %613 = vset.pattern.permute.xlu1 %v776_v12 }
  0x7a   : > { %325 = vperm.xlu1 %613, %v199_v2  }
  0xda   : > { %v342_v13 = vpop.permute.xlu1 %341  ;;  %v261_v14 = vpop.permute.xlu0 %260 }
  0xdb   : > { %v268_v31 = vrot.slane %v261_v14, %v267_v27  ;;  %v349_v34 = vrot.slane %v342_v13, %v267_v27 }
  0xdd   : > { %v270_v38 = vmul.f32 %v268_v31, %v961_v5  ;;  %v351_v44 = vmul.f32 %v349_v34, %v961_v5 }
  0xdf   : > { %v278_v18 = vpop.permute.xlu1 %277  ;;  %v255_v19 = vpop.permute.xlu0 %254  ;;  %v272_v46 = vcombine.high %v270_v38, %v270_v38  ;;  %v353_v3 = vcombine.high %v351_v44, %v351_v44 }
  0xe3   : > { %v231_v23 = vpop.permute.xlu0 %230 }
  0xe4   : > { %v336_v24 = vpop.permute.xlu1 %335 }
  0xe7   : > { %v359_v28 = vpop.permute.xlu0 %358 }
  0xe8   : > { %v233_v30 = vpop.permute.xlu1 %232 }
  0xe9   : > { %v236_v32 = vsel %vm234_vm0, %v233_v30, %v231_v23  ;;  %v235_v35 = vsel %vm234_vm0, %v231_v23, %v233_v30 }
  0xea   : > { %v239_v33 = vsel %vm237_vm1, %v236_v32, 0.0  ;;  %v240_v41 = vsel %vm238_vm2, %v235_v35, 0.0 }
  0xeb   : > { %v338_v40 = vmul.f32 %v336_v24, %v239_v33  ;;  %v257_v42 = vmul.f32 %v255_v19, %v239_v33  ;;  %v258_v49 = vmul.f32 %v255_v19, %v240_v41  ;;  %v339_v63 = vmul.f32 %v336_v24, %v240_v41 }
  0xec   : > { %v242_v36 = vpop.permute.xlu1 %241  ;;  %v309_v37 = vpop.permute.xlu0 %308 }
  0xed   : > { %v316_v39 = vrot.slane %v309_v37, %v267_v27  ;;  %v355_v52 = vadd.f32 %v351_v44, %v338_v40  ;;  %v274_v56 = vadd.f32 %v270_v38, %v257_v42  ;;  %v275_v2 = vadd.f32 %v272_v46, %v258_v49 }
  0xee   : > { %v356_v9 = vadd.f32 %v353_v3, %v339_v63 }
  0xef   : > { %v318_v43 = vmul.f32 %v316_v39, %v961_v5 }
  0xf0   : > { %v244_v45 = vpop.permute.xlu1 %243 }
  0xf1   : > { %v246_v47 = vsel %vm245_vm3, %v242_v36, %v244_v45  ;;  %v247_v48 = vsel %vm245_vm3, %v244_v45, %v242_v36  ;;  %v320_v53 = vcombine.high %v318_v43, %v318_v43  ;;  %v297_v14 = vpop.permute.xlu0 %296 }
  0xf2   : > { %v250_v50 = vsel %vm248_vm4, %v246_v47, 0.0  ;;  %v251_v51 = vsel %vm249_vm5, %v247_v48, 0.0 }
  0xf3   : > { %v280_v54 = vmul.f32 %v278_v18, %v250_v50  ;;  %v361_v55 = vmul.f32 %v359_v28, %v250_v50  ;;  %v281_v57 = vmul.f32 %v278_v18, %v251_v51  ;;  %v362_v4 = vmul.f32 %v359_v28, %v251_v51 }
  0xf4   : > { %v303_v58 = vpop.permute.xlu1 %302 }
  0xf5   : > { %v305_v59 = vmul.f32 %v303_v58, %v239_v33  ;;  %v306_v60 = vmul.f32 %v303_v58, %v240_v41  ;;  %v363_v61 = vadd.f32 %v361_v55, %v355_v52  ;;  %v282_v62 = vadd.f32 %v280_v54, %v274_v56 }
  0xf6   : > { %v283_v6 = vadd.f32 %v281_v57, %v275_v2  ;;  %v364_v12 = vadd.f32 %v362_v4, %v356_v9 }
  0xf7   : > { %v322_v0 = vadd.f32 %v318_v43, %v305_v59  ;;  %v323_v1 = vadd.f32 %v320_v53, %v306_v60  ;;  %365 = vrot.lane.b32.xlu0 %v363_v61, %s778_s21  ;;  %284 = vrot.lane.b32.xlu1 %v282_v62, %s779_s4 }
  0xf9   : > { %v326_v5 = vpop.permute.xlu1 %325 }
  0xfa   : > { %v328_v7 = vmul.f32 %v326_v5, %v250_v50  ;;  %v329_v8 = vmul.f32 %v326_v5, %v251_v51 }
  0xfb   : > { %286 = vrot.lane.b32.xlu1 %v283_v6, %s779_s4 }
  0xfc   : > { %v330_v10 = vadd.f32 %v328_v7, %v322_v0  ;;  %v331_v11 = vadd.f32 %v329_v8, %v323_v1 }
  0xff   : > { %367 = vrot.lane.b32.xlu1 %v364_v12, %s778_s21 }
 0x169   : > { %v285_v13 = vpop.permute.xlu1 %284  ;;  %v366_v22 = vpop.permute.xlu0 %365 }
 0x16d   : > { %v287_v15 = vpop.permute.xlu1 %286 }
 0x16e   : > { %v289_v16 = vsel %vm288_vm6, %v285_v13, %v287_v15  ;;  %v290_v17 = vsel %vm288_vm6, %v287_v15, %v285_v13 }
 0x16f   : > { %v293_v18 = vsel %vm291_vm7, %v290_v17, 0.0  ;;  %v300_v19 = vadd.f32 %v297_v14, %v289_v16 }
 0x170   : > { %v299_v21 = vadd.f32 %v297_v14, %v293_v18 }
 0x171   : > { %v333_v23 = vadd.f32 %v331_v11, %v300_v19  ;;  %v368_v24 = vpop.permute.xlu1 %367 }
 0x172   : > { %v332_v26 = vadd.f32 %v330_v10, %v299_v21  ;;  %v370_v27 = vsel %vm369_vm8, %v366_v22, %v368_v24  ;;  %v371_v28 = vsel %vm369_vm8, %v368_v24, %v366_v22 }
 0x173   : > { %v375_v29 = vsel %vm373_vm9, %v371_v28, 0.0 }
 0x174   : > { %v376_v30 = vadd.f32 %v370_v27, %v332_v26  ;;  %v377_v31 = vadd.f32 %v375_v29, %v333_v23 }
 0x176   : > { %v380_v32 = vcombine.low %v376_v30, %v377_v31 }
 0x178   : > { %382 = vst [vmem:[%s197_s7] sm:$0xff] %v380_v32 }
 0x179   : > { %688 = shalt.err (!%p685_p5)
}
 0x17a   : > { %s689_s18 = scalar_lea.hbm %s989_s23, 128  ;;  %s693_s3 = scalar_lea.hbm %s1040_s2, 256 }
 0x17b   : > { %p690_p10 = scmp.ne.s32.totalorder %s989_s23, %s689_s18  ;;  %p694_p7 = scmp.lt.u32.totalorder %s989_s23, %s1040_s2 }
 0x17c   : > { %p695_p3 = scmp.lt.u32.totalorder %s693_s3, %s689_s18  ;;  %p697_p4 = scmp.lt.u32.totalorder %s689_s18, %s989_s23 }
 0x17d   : > { %p691_p1 = pnand %p690_p10, %p897_p13 }
 0x17e   : > { %p696_p11 = por %p695_p3, %p694_p7 }
 0x17f   : > { %p692_p2 = pneg %p691_p1 }
 0x180   : > { %p698_p6 = por %p697_p4, %p696_p11 }
 0x182   : > { %p699_p8 = pnand %p698_p6, %p692_p2 }
 0x184   : > { %702 = shalt.err (!%p699_p8)
}
 0x185   : > { %523 = dma.vmem_to_hbm [thread:$0]  (%p897_p13), %s991_s8, 128, %s989_s23, %s384_s24  }
 0x186 PF: > { %s412_s21 = sand.u32 1, %s741_s9   ;;  %p1059_p9 = scmp.ne.s32.totalorder %s1048_s20, 0 }
 0x187   : > { %p1060_p12 = scmp.ge.s32.totalorder %s761_s14, 2  ;;  %s413_s4 = scalar_lea.sflag [#allocation4], %s412_s21 }
 0x189   : > { %p534_p0 = pnand %p1060_p12, %p1059_p9 }
 0x18b   : > { %736 = dma.done.wait (!%p534_p0), %s413_s4, 128  }
 0x18c   : > { %738 = vsyncadd (!%p534_p0), %s413_s4, 4294967168  ;;  %s19_s14 = sadd.s32 1, %s761_s14   ;;  %s1061_s9 = smov %s745_s10 }
 0x18d   : > { %p16_p5 = scmp.ge.s32.totalorder %s19_s14, 4   ;;  %s1062_s10 = smov %s749_s11 }
 0x18e   : > { %s1063_s11 = smov %s905_s28  ;;  %s1064_s12 = smov %s757_s13 }
 0x18f   : > { %s1065_s13 = smov %s1067_s25  ;;  %18 = sbr.rel (!%p16_p5) target bundleno = 7 (0x7), region = 79 }
 0x196   :  { %418 = vsyncpa [#allocation3], 1 }
 0x197   :  { %420 = vsyncpa [#allocation3 + $0x1], 1 }
 0x198   :  { %421 = vsyncpa [#allocation6], 1 }
 0x199   :  { %423 = vsyncpa [#allocation6 + $0x1], 1 }
 0x19a   :  { %424 = vsyncpa [#allocation4], 1 }
 0x19b   :  { %426 = vsyncpa [#allocation4 + $0x1], 1 }

</bundles_post_ra>
